<compile_context>
chip_gen: v7x
topology: tpu7x:2x2x1
jax: 0.10.0
libtpu: 0.0.40
codegen_flags: <defaults>
</compile_context>

<pallas_src>
import jax
import jax.numpy as jnp
from jax.experimental import pallas as pl
from jax.experimental.pallas import tpu as pltpu


def _make_spectral_kernel(Cin):
    def kernel(x_ref, w_ref, or_ref, oi_ref):
        # x_ref : (2, Cin, B, M)     [real/imag, cin, batch, flattened modes]
        # w_ref : (3, Cin, Tco, M)   [wr, wi-wr, wr+wi, cin, cout_blk, modes]
        # or_ref / oi_ref : (B, Tco, M)   packed corner slabs for this Cout block
        acc_r = None
        acc_i = None
        # Unrolled Cin accumulation in registers (Cin is small & static).
        for i in range(Cin):
            xr = x_ref[0, i]                  # (B, M)  contiguous load
            xi = x_ref[1, i]
            xs = xr + xi                      # small (B, M) add
            wa = w_ref[0, i]                  # (Tco, M)
            wb = w_ref[1, i]                  # wi - wr  (precomputed in XLA)
            wc = w_ref[2, i]                  # wr + wi  (precomputed in XLA)
            # Karatsuba complex product: 3 output-sized multiplies.
            k1 = xs[:, None, :] * wa[None, :, :]   # (B, Tco, M)
            k2 = xr[:, None, :] * wb[None, :, :]
            k3 = xi[:, None, :] * wc[None, :, :]
            tr = k1 - k3                      # real part of x*w
            ti = k1 + k2                      # imag part of x*w
            acc_r = tr if acc_r is None else acc_r + tr
            acc_i = ti if acc_i is None else acc_i + ti
        or_ref[...] = acc_r
        oi_ref[...] = acc_i

    return kernel


def _padded_bytes(shape, itemsize=4):
    """VMEM footprint of one buffer with (8, 128) tile padding on the last two dims."""
    s = list(shape)
    s[-1] = -(-s[-1] // 128) * 128
    if len(s) >= 2:
        s[-2] = -(-s[-2] // 8) * 8
    n = 1
    for d in s:
        n *= d
    return n * itemsize


def spectral_conv2d(x, w1r, w1i, w2r, w2i, modes1, modes2, cout_block=None):
    """Forward pass of SpectralConv2d (matches the PyTorch module).

    x:  (B, Cin, H, W) float32 (NCHW)
    w1r/w1i, w2r/w2i: (Cin, Cout, modes1, modes2) float32 (real/imag of cfloat weights)
    returns: (B, Cout, H, W) float32
    """
    B, Cin, H, W = x.shape
    Cout = w1r.shape[1]
    m1, m2 = modes1, modes2
    Wf = W // 2 + 1
    MM = m1 * m2
    M = 2 * MM                                   # both corners folded into the lane axis
    assert m1 <= H and m2 <= Wf, "modes must fit inside the rFFT spectrum"

    if cout_block is None:
        cout_block = Cout if Cout <= 128 else 64
    Tco = cout_block
    assert Cout % Tco == 0
    # Tco sits on the second-to-last dim of the w/out blocks -> (8,128) rule.
    assert Tco == Cout or Tco % 8 == 0
    n_blk = Cout // Tco

    # ---- FFT (glue, not in Pallas) -----------------------------------------
    x_ft = jnp.fft.rfft2(x)                                   # (B, Cin, H, Wf) complex64
    top = x_ft[:, :, :m1, :m2].reshape(B, Cin, MM)            # low-frequency corner
    bot = x_ft[:, :, H - m1:, :m2].reshape(B, Cin, MM)        # negative-frequency corner
    xc = jnp.concatenate([top, bot], axis=-1)                 # (B, Cin, M) complex
    xc = jnp.transpose(xc, (1, 0, 2))                         # (Cin, B, M)
    x_pack = jnp.stack([xc.real, xc.imag], axis=0).astype(jnp.float32)   # (2, Cin, B, M)

    # Weight planes: wr, wi - wr, wr + wi (Karatsuba terms precomputed in XLA).
    wr = jnp.concatenate(
        [w1r.reshape(Cin, Cout, MM), w2r.reshape(Cin, Cout, MM)], axis=-1)
    wi = jnp.concatenate(
        [w1i.reshape(Cin, Cout, MM), w2i.reshape(Cin, Cout, MM)], axis=-1)
    w_pack = jnp.stack([wr, wi - wr, wr + wi], axis=0).astype(jnp.float32)  # (3,Cin,Cout,M)

    # ---- Pallas: lane-dense channel contraction ----------------------------
    kernel = _make_spectral_kernel(Cin)

    x_spec = pl.BlockSpec((2, Cin, B, M), lambda j: (0, 0, 0, 0))
    w_spec = pl.BlockSpec((3, Cin, Tco, M), lambda j: (0, 0, j, 0))
    o_spec = pl.BlockSpec((B, Tco, M), lambda j: (0, j, 0))

    # Padding-aware VMEM budget (double-buffered in/out blocks + headroom),
    # capped well inside v7x's 64 MiB physical VMEM.
    blk_bytes = (_padded_bytes((2, Cin, B, M))
                 + _padded_bytes((3, Cin, Tco, M))
                 + 2 * _padded_bytes((B, Tco, M)))
    vmem_limit = int(min(max(2 * blk_bytes + (4 << 20), 16 << 20), 48 << 20))

    out_r, out_i = pl.pallas_call(
        kernel,
        out_shape=(
            jax.ShapeDtypeStruct((B, Cout, M), jnp.float32),
            jax.ShapeDtypeStruct((B, Cout, M), jnp.float32),
        ),
        grid=(n_blk,),
        in_specs=[x_spec, w_spec],
        out_specs=(o_spec, o_spec),
        compiler_params=pltpu.CompilerParams(
            dimension_semantics=("parallel",),
            vmem_limit_bytes=vmem_limit,
        ),
    )(x_pack, w_pack)

    # ---- corner scatter + inverse FFT (glue, not in Pallas) -----------------
    r_top = out_r[..., :MM].reshape(B, Cout, m1, m2)
    r_bot = out_r[..., MM:].reshape(B, Cout, m1, m2)
    i_top = out_i[..., :MM].reshape(B, Cout, m1, m2)
    i_bot = out_i[..., MM:].reshape(B, Cout, m1, m2)

    out_ft = jnp.zeros((B, Cout, H, Wf), dtype=jnp.complex64)
    # Write order (top then bottom) matches the PyTorch module, so behaviour
    # is identical even if 2*modes1 > H and the corner row ranges overlap.
    out_ft = out_ft.at[:, :, :m1, :m2].set(jax.lax.complex(r_top, i_top))
    out_ft = out_ft.at[:, :, H - m1:, :m2].set(jax.lax.complex(r_bot, i_bot))

    return jnp.fft.irfft2(out_ft, s=(H, W)).astype(jnp.float32)


def _reference(x, w1r, w1i, w2r, w2i, m1, m2):
    """Pure-JAX reference mirroring the PyTorch forward exactly."""
    B, Cin, H, W = x.shape
    Cout = w1r.shape[1]
    w1 = (w1r + 1j * w1i).astype(jnp.complex64)
    w2 = (w2r + 1j * w2i).astype(jnp.complex64)
    x_ft = jnp.fft.rfft2(x)
    out_ft = jnp.zeros((B, Cout, H, W // 2 + 1), dtype=jnp.complex64)
    out_ft = out_ft.at[:, :, :m1, :m2].set(
        jnp.einsum('bixy,ioxy->boxy', x_ft[:, :, :m1, :m2], w1))
    out_ft = out_ft.at[:, :, H - m1:, :m2].set(
        jnp.einsum('bixy,ioxy->boxy', x_ft[:, :, H - m1:, :m2], w2))
    return jnp.fft.irfft2(out_ft, s=(H, W)).astype(jnp.float32)


if __name__ == "__main__":
    key = jax.random.PRNGKey(0)
    B, Cin, Cout, H, W = 2, 4, 4, 16, 16
    modes1, modes2 = 8, 8                        # modes2 <= W//2 + 1

    k_x, k1r, k1i, k2r, k2i = jax.random.split(key, 5)
    x = jax.random.normal(k_x, (B, Cin, H, W), dtype=jnp.float32)

    scale = 1.0 / (Cin * Cout)
    # torch.rand(..., dtype=cfloat): uniform [0, 1) on both real and imag parts
    w1r = scale * jax.random.uniform(k1r, (Cin, Cout, modes1, modes2), dtype=jnp.float32)
    w1i = scale * jax.random.uniform(k1i, (Cin, Cout, modes1, modes2), dtype=jnp.float32)
    w2r = scale * jax.random.uniform(k2r, (Cin, Cout, modes1, modes2), dtype=jnp.float32)
    w2i = scale * jax.random.uniform(k2i, (Cin, Cout, modes1, modes2), dtype=jnp.float32)

    fwd = jax.jit(spectral_conv2d, static_argnames=("modes1", "modes2", "cout_block"))
    out = jax.block_until_ready(fwd(x, w1r, w1i, w2r, w2i, modes1=modes1, modes2=modes2))

    ref = jax.block_until_ready(_reference(x, w1r, w1i, w2r, w2i, modes1, modes2))
    assert out.shape == (B, Cout, H, W)
    assert jnp.allclose(out, ref, atol=1e-4, rtol=1e-4)

    print("KERNEL_OK")
</pallas_src>

<mosaic_0001>
module attributes {stable_mosaic.version = 11 : i64} {
  func.func @kernel(%arg0: i32, %arg1: memref<2x4x2x128xf32, #tpu.memory_space<vmem>>, %arg2: memref<3x4x4x128xf32, #tpu.memory_space<vmem>>, %arg3: memref<2x4x128xf32, #tpu.memory_space<vmem>>, %arg4: memref<2x4x128xf32, #tpu.memory_space<vmem>>) attributes {dimension_semantics = [#tpu.dimension_semantics<parallel>], iteration_bounds = array<i64: 1>, scalar_prefetch = 0 : i64, scratch_operands = 0 : i64, tpu.core_type = #tpu.core_type<tc>, window_params = [{pipeline_mode = #tpu.pipeline_mode<synchronous>, transform_indices = @transform_0, window_bounds = array<i64: 2, 4, 2, 128>}, {transform_indices = @transform_1, window_bounds = array<i64: 3, 4, 4, 128>}, {transform_indices = @transform_2, window_bounds = array<i64: 2, 4, 128>}, {transform_indices = @transform_3, window_bounds = array<i64: 2, 4, 128>}]} {
    %c0 = arith.constant 0 : index
    %c0_0 = arith.constant 0 : index
    %c0_1 = arith.constant 0 : index
    %c0_2 = arith.constant 0 : index
    %0 = vector.load %arg1[%c0, %c0_0, %c0_1, %c0_2] : memref<2x4x2x128xf32, #tpu.memory_space<vmem>>, vector<1x1x2x128xf32>
    %1 = vector.shape_cast %0 : vector<1x1x2x128xf32> to vector<2x128xf32>
    %c1 = arith.constant 1 : index
    %c0_3 = arith.constant 0 : index
    %c0_4 = arith.constant 0 : index
    %c0_5 = arith.constant 0 : index
    %2 = vector.load %arg1[%c1, %c0_3, %c0_4, %c0_5] : memref<2x4x2x128xf32, #tpu.memory_space<vmem>>, vector<1x1x2x128xf32>
    %3 = vector.shape_cast %2 : vector<1x1x2x128xf32> to vector<2x128xf32>
    %4 = arith.addf %1, %3 : vector<2x128xf32>
    %c0_6 = arith.constant 0 : index
    %c0_7 = arith.constant 0 : index
    %c0_8 = arith.constant 0 : index
    %c0_9 = arith.constant 0 : index
    %5 = vector.load %arg2[%c0_6, %c0_7, %c0_8, %c0_9] : memref<3x4x4x128xf32, #tpu.memory_space<vmem>>, vector<1x1x4x128xf32>
    %6 = vector.shape_cast %5 : vector<1x1x4x128xf32> to vector<4x128xf32>
    %c1_10 = arith.constant 1 : index
    %c0_11 = arith.constant 0 : index
    %c0_12 = arith.constant 0 : index
    %c0_13 = arith.constant 0 : index
    %7 = vector.load %arg2[%c1_10, %c0_11, %c0_12, %c0_13] : memref<3x4x4x128xf32, #tpu.memory_space<vmem>>, vector<1x1x4x128xf32>
    %8 = vector.shape_cast %7 : vector<1x1x4x128xf32> to vector<4x128xf32>
    %c2 = arith.constant 2 : index
    %c0_14 = arith.constant 0 : index
    %c0_15 = arith.constant 0 : index
    %c0_16 = arith.constant 0 : index
    %9 = vector.load %arg2[%c2, %c0_14, %c0_15, %c0_16] : memref<3x4x4x128xf32, #tpu.memory_space<vmem>>, vector<1x1x4x128xf32>
    %10 = vector.shape_cast %9 : vector<1x1x4x128xf32> to vector<4x128xf32>
    %11 = vector.shape_cast %4 : vector<2x128xf32> to vector<2x1x128xf32>
    %12 = vector.shape_cast %6 : vector<4x128xf32> to vector<1x4x128xf32>
    %13 = vector.broadcast %11 : vector<2x1x128xf32> to vector<2x4x128xf32>
    %14 = vector.broadcast %12 : vector<1x4x128xf32> to vector<2x4x128xf32>
    %15 = arith.mulf %13, %14 : vector<2x4x128xf32>
    %16 = vector.shape_cast %1 : vector<2x128xf32> to vector<2x1x128xf32>
    %17 = vector.shape_cast %8 : vector<4x128xf32> to vector<1x4x128xf32>
    %18 = vector.broadcast %16 : vector<2x1x128xf32> to vector<2x4x128xf32>
    %19 = vector.broadcast %17 : vector<1x4x128xf32> to vector<2x4x128xf32>
    %20 = arith.mulf %18, %19 : vector<2x4x128xf32>
    %21 = vector.shape_cast %3 : vector<2x128xf32> to vector<2x1x128xf32>
    %22 = vector.shape_cast %10 : vector<4x128xf32> to vector<1x4x128xf32>
    %23 = vector.broadcast %21 : vector<2x1x128xf32> to vector<2x4x128xf32>
    %24 = vector.broadcast %22 : vector<1x4x128xf32> to vector<2x4x128xf32>
    %25 = arith.mulf %23, %24 : vector<2x4x128xf32>
    %26 = arith.subf %15, %25 : vector<2x4x128xf32>
    %27 = arith.addf %15, %20 : vector<2x4x128xf32>
    %c0_17 = arith.constant 0 : index
    %c1_18 = arith.constant 1 : index
    %c0_19 = arith.constant 0 : index
    %c0_20 = arith.constant 0 : index
    %28 = vector.load %arg1[%c0_17, %c1_18, %c0_19, %c0_20] : memref<2x4x2x128xf32, #tpu.memory_space<vmem>>, vector<1x1x2x128xf32>
    %29 = vector.shape_cast %28 : vector<1x1x2x128xf32> to vector<2x128xf32>
    %c1_21 = arith.constant 1 : index
    %c1_22 = arith.constant 1 : index
    %c0_23 = arith.constant 0 : index
    %c0_24 = arith.constant 0 : index
    %30 = vector.load %arg1[%c1_21, %c1_22, %c0_23, %c0_24] : memref<2x4x2x128xf32, #tpu.memory_space<vmem>>, vector<1x1x2x128xf32>
    %31 = vector.shape_cast %30 : vector<1x1x2x128xf32> to vector<2x128xf32>
    %32 = arith.addf %29, %31 : vector<2x128xf32>
    %c0_25 = arith.constant 0 : index
    %c1_26 = arith.constant 1 : index
    %c0_27 = arith.constant 0 : index
    %c0_28 = arith.constant 0 : index
    %33 = vector.load %arg2[%c0_25, %c1_26, %c0_27, %c0_28] : memref<3x4x4x128xf32, #tpu.memory_space<vmem>>, vector<1x1x4x128xf32>
    %34 = vector.shape_cast %33 : vector<1x1x4x128xf32> to vector<4x128xf32>
    %c1_29 = arith.constant 1 : index
    %c1_30 = arith.constant 1 : index
    %c0_31 = arith.constant 0 : index
    %c0_32 = arith.constant 0 : index
    %35 = vector.load %arg2[%c1_29, %c1_30, %c0_31, %c0_32] : memref<3x4x4x128xf32, #tpu.memory_space<vmem>>, vector<1x1x4x128xf32>
    %36 = vector.shape_cast %35 : vector<1x1x4x128xf32> to vector<4x128xf32>
    %c2_33 = arith.constant 2 : index
    %c1_34 = arith.constant 1 : index
    %c0_35 = arith.constant 0 : index
    %c0_36 = arith.constant 0 : index
    %37 = vector.load %arg2[%c2_33, %c1_34, %c0_35, %c0_36] : memref<3x4x4x128xf32, #tpu.memory_space<vmem>>, vector<1x1x4x128xf32>
    %38 = vector.shape_cast %37 : vector<1x1x4x128xf32> to vector<4x128xf32>
    %39 = vector.shape_cast %32 : vector<2x128xf32> to vector<2x1x128xf32>
    %40 = vector.shape_cast %34 : vector<4x128xf32> to vector<1x4x128xf32>
    %41 = vector.broadcast %39 : vector<2x1x128xf32> to vector<2x4x128xf32>
    %42 = vector.broadcast %40 : vector<1x4x128xf32> to vector<2x4x128xf32>
    %43 = arith.mulf %41, %42 : vector<2x4x128xf32>
    %44 = vector.shape_cast %29 : vector<2x128xf32> to vector<2x1x128xf32>
    %45 = vector.shape_cast %36 : vector<4x128xf32> to vector<1x4x128xf32>
    %46 = vector.broadcast %44 : vector<2x1x128xf32> to vector<2x4x128xf32>
    %47 = vector.broadcast %45 : vector<1x4x128xf32> to vector<2x4x128xf32>
    %48 = arith.mulf %46, %47 : vector<2x4x128xf32>
    %49 = vector.shape_cast %31 : vector<2x128xf32> to vector<2x1x128xf32>
    %50 = vector.shape_cast %38 : vector<4x128xf32> to vector<1x4x128xf32>
    %51 = vector.broadcast %49 : vector<2x1x128xf32> to vector<2x4x128xf32>
    %52 = vector.broadcast %50 : vector<1x4x128xf32> to vector<2x4x128xf32>
    %53 = arith.mulf %51, %52 : vector<2x4x128xf32>
    %54 = arith.subf %43, %53 : vector<2x4x128xf32>
    %55 = arith.addf %43, %48 : vector<2x4x128xf32>
    %56 = arith.addf %26, %54 : vector<2x4x128xf32>
    %57 = arith.addf %27, %55 : vector<2x4x128xf32>
    %c0_37 = arith.constant 0 : index
    %c2_38 = arith.constant 2 : index
    %c0_39 = arith.constant 0 : index
    %c0_40 = arith.constant 0 : index
    %58 = vector.load %arg1[%c0_37, %c2_38, %c0_39, %c0_40] : memref<2x4x2x128xf32, #tpu.memory_space<vmem>>, vector<1x1x2x128xf32>
    %59 = vector.shape_cast %58 : vector<1x1x2x128xf32> to vector<2x128xf32>
    %c1_41 = arith.constant 1 : index
    %c2_42 = arith.constant 2 : index
    %c0_43 = arith.constant 0 : index
    %c0_44 = arith.constant 0 : index
    %60 = vector.load %arg1[%c1_41, %c2_42, %c0_43, %c0_44] : memref<2x4x2x128xf32, #tpu.memory_space<vmem>>, vector<1x1x2x128xf32>
    %61 = vector.shape_cast %60 : vector<1x1x2x128xf32> to vector<2x128xf32>
    %62 = arith.addf %59, %61 : vector<2x128xf32>
    %c0_45 = arith.constant 0 : index
    %c2_46 = arith.constant 2 : index
    %c0_47 = arith.constant 0 : index
    %c0_48 = arith.constant 0 : index
    %63 = vector.load %arg2[%c0_45, %c2_46, %c0_47, %c0_48] : memref<3x4x4x128xf32, #tpu.memory_space<vmem>>, vector<1x1x4x128xf32>
    %64 = vector.shape_cast %63 : vector<1x1x4x128xf32> to vector<4x128xf32>
    %c1_49 = arith.constant 1 : index
    %c2_50 = arith.constant 2 : index
    %c0_51 = arith.constant 0 : index
    %c0_52 = arith.constant 0 : index
    %65 = vector.load %arg2[%c1_49, %c2_50, %c0_51, %c0_52] : memref<3x4x4x128xf32, #tpu.memory_space<vmem>>, vector<1x1x4x128xf32>
    %66 = vector.shape_cast %65 : vector<1x1x4x128xf32> to vector<4x128xf32>
    %c2_53 = arith.constant 2 : index
    %c2_54 = arith.constant 2 : index
    %c0_55 = arith.constant 0 : index
    %c0_56 = arith.constant 0 : index
    %67 = vector.load %arg2[%c2_53, %c2_54, %c0_55, %c0_56] : memref<3x4x4x128xf32, #tpu.memory_space<vmem>>, vector<1x1x4x128xf32>
    %68 = vector.shape_cast %67 : vector<1x1x4x128xf32> to vector<4x128xf32>
    %69 = vector.shape_cast %62 : vector<2x128xf32> to vector<2x1x128xf32>
    %70 = vector.shape_cast %64 : vector<4x128xf32> to vector<1x4x128xf32>
    %71 = vector.broadcast %69 : vector<2x1x128xf32> to vector<2x4x128xf32>
    %72 = vector.broadcast %70 : vector<1x4x128xf32> to vector<2x4x128xf32>
    %73 = arith.mulf %71, %72 : vector<2x4x128xf32>
    %74 = vector.shape_cast %59 : vector<2x128xf32> to vector<2x1x128xf32>
    %75 = vector.shape_cast %66 : vector<4x128xf32> to vector<1x4x128xf32>
    %76 = vector.broadcast %74 : vector<2x1x128xf32> to vector<2x4x128xf32>
    %77 = vector.broadcast %75 : vector<1x4x128xf32> to vector<2x4x128xf32>
    %78 = arith.mulf %76, %77 : vector<2x4x128xf32>
    %79 = vector.shape_cast %61 : vector<2x128xf32> to vector<2x1x128xf32>
    %80 = vector.shape_cast %68 : vector<4x128xf32> to vector<1x4x128xf32>
    %81 = vector.broadcast %79 : vector<2x1x128xf32> to vector<2x4x128xf32>
    %82 = vector.broadcast %80 : vector<1x4x128xf32> to vector<2x4x128xf32>
    %83 = arith.mulf %81, %82 : vector<2x4x128xf32>
    %84 = arith.subf %73, %83 : vector<2x4x128xf32>
    %85 = arith.addf %73, %78 : vector<2x4x128xf32>
    %86 = arith.addf %56, %84 : vector<2x4x128xf32>
    %87 = arith.addf %57, %85 : vector<2x4x128xf32>
    %c0_57 = arith.constant 0 : index
    %c3 = arith.constant 3 : index
    %c0_58 = arith.constant 0 : index
    %c0_59 = arith.constant 0 : index
    %88 = vector.load %arg1[%c0_57, %c3, %c0_58, %c0_59] : memref<2x4x2x128xf32, #tpu.memory_space<vmem>>, vector<1x1x2x128xf32>
    %89 = vector.shape_cast %88 : vector<1x1x2x128xf32> to vector<2x128xf32>
    %c1_60 = arith.constant 1 : index
    %c3_61 = arith.constant 3 : index
    %c0_62 = arith.constant 0 : index
    %c0_63 = arith.constant 0 : index
    %90 = vector.load %arg1[%c1_60, %c3_61, %c0_62, %c0_63] : memref<2x4x2x128xf32, #tpu.memory_space<vmem>>, vector<1x1x2x128xf32>
    %91 = vector.shape_cast %90 : vector<1x1x2x128xf32> to vector<2x128xf32>
    %92 = arith.addf %89, %91 : vector<2x128xf32>
    %c0_64 = arith.constant 0 : index
    %c3_65 = arith.constant 3 : index
    %c0_66 = arith.constant 0 : index
    %c0_67 = arith.constant 0 : index
    %93 = vector.load %arg2[%c0_64, %c3_65, %c0_66, %c0_67] : memref<3x4x4x128xf32, #tpu.memory_space<vmem>>, vector<1x1x4x128xf32>
    %94 = vector.shape_cast %93 : vector<1x1x4x128xf32> to vector<4x128xf32>
    %c1_68 = arith.constant 1 : index
    %c3_69 = arith.constant 3 : index
    %c0_70 = arith.constant 0 : index
    %c0_71 = arith.constant 0 : index
    %95 = vector.load %arg2[%c1_68, %c3_69, %c0_70, %c0_71] : memref<3x4x4x128xf32, #tpu.memory_space<vmem>>, vector<1x1x4x128xf32>
    %96 = vector.shape_cast %95 : vector<1x1x4x128xf32> to vector<4x128xf32>
    %c2_72 = arith.constant 2 : index
    %c3_73 = arith.constant 3 : index
    %c0_74 = arith.constant 0 : index
    %c0_75 = arith.constant 0 : index
    %97 = vector.load %arg2[%c2_72, %c3_73, %c0_74, %c0_75] : memref<3x4x4x128xf32, #tpu.memory_space<vmem>>, vector<1x1x4x128xf32>
    %98 = vector.shape_cast %97 : vector<1x1x4x128xf32> to vector<4x128xf32>
    %99 = vector.shape_cast %92 : vector<2x128xf32> to vector<2x1x128xf32>
    %100 = vector.shape_cast %94 : vector<4x128xf32> to vector<1x4x128xf32>
    %101 = vector.broadcast %99 : vector<2x1x128xf32> to vector<2x4x128xf32>
    %102 = vector.broadcast %100 : vector<1x4x128xf32> to vector<2x4x128xf32>
    %103 = arith.mulf %101, %102 : vector<2x4x128xf32>
    %104 = vector.shape_cast %89 : vector<2x128xf32> to vector<2x1x128xf32>
    %105 = vector.shape_cast %96 : vector<4x128xf32> to vector<1x4x128xf32>
    %106 = vector.broadcast %104 : vector<2x1x128xf32> to vector<2x4x128xf32>
    %107 = vector.broadcast %105 : vector<1x4x128xf32> to vector<2x4x128xf32>
    %108 = arith.mulf %106, %107 : vector<2x4x128xf32>
    %109 = vector.shape_cast %91 : vector<2x128xf32> to vector<2x1x128xf32>
    %110 = vector.shape_cast %98 : vector<4x128xf32> to vector<1x4x128xf32>
    %111 = vector.broadcast %109 : vector<2x1x128xf32> to vector<2x4x128xf32>
    %112 = vector.broadcast %110 : vector<1x4x128xf32> to vector<2x4x128xf32>
    %113 = arith.mulf %111, %112 : vector<2x4x128xf32>
    %114 = arith.subf %103, %113 : vector<2x4x128xf32>
    %115 = arith.addf %103, %108 : vector<2x4x128xf32>
    %116 = arith.addf %86, %114 : vector<2x4x128xf32>
    %117 = arith.addf %87, %115 : vector<2x4x128xf32>
    %c0_76 = arith.constant 0 : index
    %c0_77 = arith.constant 0 : index
    %c0_78 = arith.constant 0 : index
    %118 = vector.load %arg3[%c0_76, %c0_77, %c0_78] : memref<2x4x128xf32, #tpu.memory_space<vmem>>, vector<2x4x128xf32>
    tpu.vector_store %arg3[%c0_76, %c0_77, %c0_78], %116 {strides = array<i32>} : memref<2x4x128xf32, #tpu.memory_space<vmem>>, vector<2x4x128xf32>,
    %c0_79 = arith.constant 0 : index
    %c0_80 = arith.constant 0 : index
    %c0_81 = arith.constant 0 : index
    %119 = vector.load %arg4[%c0_79, %c0_80, %c0_81] : memref<2x4x128xf32, #tpu.memory_space<vmem>>, vector<2x4x128xf32>
    tpu.vector_store %arg4[%c0_79, %c0_80, %c0_81], %117 {strides = array<i32>} : memref<2x4x128xf32, #tpu.memory_space<vmem>>, vector<2x4x128xf32>,
    return
  }
  func.func @transform_0(%arg0: i32) -> (i32, i32, i32, i32) {
    %c0_i32 = arith.constant 0 : i32
    %c0_i32_0 = arith.constant 0 : i32
    %c0_i32_1 = arith.constant 0 : i32
    %c0_i32_2 = arith.constant 0 : i32
    %c0_i32_3 = arith.constant 0 : i32
    return %c0_i32, %c0_i32_0, %c0_i32_1, %c0_i32_2 : i32, i32, i32, i32
  }
  func.func @transform_1(%arg0: i32) -> (i32, i32, i32, i32) {
    %c0_i32 = arith.constant 0 : i32
    %c0_i32_0 = arith.constant 0 : i32
    %c0_i32_1 = arith.constant 0 : i32
    %c0_i32_2 = arith.constant 0 : i32
    return %c0_i32, %c0_i32_0, %arg0, %c0_i32_1 : i32, i32, i32, i32
  }
  func.func @transform_2(%arg0: i32) -> (i32, i32, i32) {
    %c0_i32 = arith.constant 0 : i32
    %c0_i32_0 = arith.constant 0 : i32
    %c0_i32_1 = arith.constant 0 : i32
    return %c0_i32, %arg0, %c0_i32_0 : i32, i32, i32
  }
  func.func @transform_3(%arg0: i32) -> (i32, i32, i32) {
    %c0_i32 = arith.constant 0 : i32
    %c0_i32_0 = arith.constant 0 : i32
    %c0_i32_1 = arith.constant 0 : i32
    return %c0_i32, %arg0, %c0_i32_0 : i32, i32, i32
  }
}

</mosaic_0001>

<bundles_post_ra>
// kernel: reverse.0
= control target key start
LH: loop header
LB: loop body
LE: loop exit
PB: predicated region body
PF: predicated region fallthrough
CT: control target
= control target key end

     0   :  { %v71_v3 = vlaneseq  ;;  %v64_v9 = vld [vmem:[#allocation0 + $0x7] ss:$-1 sm:$0xff]  ;;  %v78_v12 = vld [vmem:[#allocation0 + $0x17] ss:$-1 sm:$0xff]  ;;  %s329_s0 = inlined_call_operand.vmem [shape: f32[2,4,16,7], index: 0, kind: input, shape index: {}]   ;;  %s330_s1 = inlined_call_operand.vmem [shape: f32[2,4,16,7], index: 1, kind: output, shape index: {}]  }
   0x1   :  { %v44_v0 = vld [vmem:[%s329_s0] sm:$0xff]  ;;  %v46_v1 = vld [vmem:[%s329_s0 + $0x8] sm:$0xff]  ;;  %v48_v2 = vld [vmem:[%s329_s0 + $0x10] sm:$0xff]  ;;  %v65_v10 = vrot.slane %v64_v9, 1  ;;  %v79_v14 = vrot.slane %v78_v12, 1 }
   0x2   :  { %45 = vst [vmem:[#allocation0 + $0x8] sm:$0xff] %v44_v0  ;;  %47 = vst [vmem:[#allocation0 + $0x18] sm:$0xff] %v46_v1  ;;  %v50_v4 = vld [vmem:[%s329_s0 + $0x18] sm:$0xff]  ;;  %v52_v5 = vld [vmem:[%s329_s0 + $0x20] sm:$0xff]  ;;  %v72_v11 = vshrl.u32 %v71_v3, 7 }
   0x3   :  { %49 = vst [vmem:[#allocation0 + $0x28] sm:$0xff] %v48_v2  ;;  %v54_v6 = vld [vmem:[%s329_s0 + $0x28] sm:$0xff]  ;;  %51 = vst [vmem:[#allocation0 + $0x38] sm:$0xff] %v50_v4  ;;  %v56_v7 = vld [vmem:[%s329_s0 + $0x30] sm:$0xff] }
   0x4   :  { %53 = vst [vmem:[#allocation0 + $0x48] sm:$0xff] %v52_v5  ;;  %55 = vst [vmem:[#allocation0 + $0x58] sm:$0xff] %v54_v6  ;;  %v58_v8 = vld [vmem:[%s329_s0 + $0x38] sm:$0xff]  ;;  %v92_v13 = vld [vmem:[#allocation0 + $0x27] ss:$-1 sm:$0xff]  ;;  %vm73_vm0 = vcmp.lt.s32.totalorder %v72_v11, 7 }
   0x5   :  { %57 = vst [vmem:[#allocation0 + $0x68] sm:$0xff] %v56_v7  ;;  %59 = vst [vmem:[#allocation0 + $0x78] sm:$0xff] %v58_v8  ;;  %v93_v15 = vrot.slane %v92_v13, 1  ;;  %v106_v16 = vld [vmem:[#allocation0 + $0x37] ss:$-1 sm:$0xff] }
   0x6   :  { %66 = vst [vmem:[#allocation1] sm:$0xff] %v65_v10  ;;  %v107_v17 = vrot.slane %v106_v16, 1  ;;  %v120_v18 = vld [vmem:[#allocation0 + $0x47] ss:$-1 sm:$0xff]  ;;  %v134_v19 = vld [vmem:[#allocation0 + $0x57] ss:$-1 sm:$0xff] }
   0x7   :  { %80 = vst [vmem:[#allocation1 + $0x8] sm:$0xff] %v79_v14  ;;  %94 = vst [vmem:[#allocation1 + $0x10] sm:$0xff] %v93_v15  ;;  %v121_v20 = vrot.slane %v120_v18, 1  ;;  %v135_v21 = vrot.slane %v134_v19, 1  ;;  %v148_v22 = vld [vmem:[#allocation0 + $0x67] ss:$-1 sm:$0xff] }
   0x8   :  { %v162_v23 = vld [vmem:[#allocation0 + $0x77] ss:$-1 sm:$0xff]  ;;  %108 = vst [vmem:[#allocation1 + $0x18] sm:$0xff] %v107_v17  ;;  %v149_v24 = vrot.slane %v148_v22, 1 }
   0x9   :  { %v163_v25 = vrot.slane %v162_v23, 1  ;;  %v69_v26 = vld [vmem:[#allocation0 + $0xf] ss:$-1 sm:$0xff]  ;;  %v83_v27 = vld [vmem:[#allocation0 + $0x1f] ss:$-1 sm:$0xff]  ;;  %122 = vst [vmem:[#allocation1 + $0x20] sm:$0xff] %v121_v20 }
   0xa   :  { %v97_v28 = vld [vmem:[#allocation0 + $0x2f] ss:$-1 sm:$0xff]  ;;  %136 = vst [vmem:[#allocation1 + $0x28] sm:$0xff] %v135_v21  ;;  %v70_v29 = vrot.slane %v69_v26, 1  ;;  %v84_v30 = vrot.slane %v83_v27, 1  ;;  %150 = vst [vmem:[#allocation1 + $0x30] sm:$0xff] %v149_v24 }
   0xb   :  { %v98_v31 = vrot.slane %v97_v28, 1  ;;  %v111_v32 = vld [vmem:[#allocation0 + $0x3f] ss:$-1 sm:$0xff]  ;;  %164 = vst [vmem:[#allocation1 + $0x38] sm:$0xff] %v163_v25  ;;  %v125_v34 = vld [vmem:[#allocation0 + $0x4f] ss:$-1 sm:$0xff] }
   0xc   :  { %v112_v33 = vrot.slane %v111_v32, 1  ;;  %v139_v35 = vld [vmem:[#allocation0 + $0x5f] ss:$-1 sm:$0xff]  ;;  %74 = vst.msk [vmem:[#allocation1] sm:$0xff] %vm73_vm0, %v70_v29  ;;  %88 = vst.msk [vmem:[#allocation1 + $0x8] sm:$0xff] %vm73_vm0, %v84_v30  ;;  %v126_v36 = vrot.slane %v125_v34, 1 }
   0xd   :  { %102 = vst.msk [vmem:[#allocation1 + $0x10] sm:$0xff] %vm73_vm0, %v98_v31  ;;  %v140_v37 = vrot.slane %v139_v35, 1  ;;  %v153_v38 = vld [vmem:[#allocation0 + $0x6f] ss:$-1 sm:$0xff]  ;;  %v167_v39 = vld [vmem:[#allocation0 + $0x7f] ss:$-1 sm:$0xff] }
   0xe   :  { %116 = vst.msk [vmem:[#allocation1 + $0x18] sm:$0xff] %vm73_vm0, %v112_v33  ;;  %v154_v40 = vrot.slane %v153_v38, 1  ;;  %v168_v41 = vrot.slane %v167_v39, 1  ;;  %130 = vst.msk [vmem:[#allocation1 + $0x20] sm:$0xff] %vm73_vm0, %v126_v36 }
   0xf   :  { %144 = vst.msk [vmem:[#allocation1 + $0x28] sm:$0xff] %vm73_vm0, %v140_v37 }
  0x10   :  { %158 = vst.msk [vmem:[#allocation1 + $0x30] sm:$0xff] %vm73_vm0, %v154_v40  ;;  %172 = vst.msk [vmem:[#allocation1 + $0x38] sm:$0xff] %vm73_vm0, %v168_v41 }
  0x13   :  { %v214_v42 = vld [vmem:[#allocation1] sm:$0xff]  ;;  %v216_v43 = vld [vmem:[#allocation1 + $0x8] sm:$0xff] }
  0x14   :  { %v218_v44 = vld [vmem:[#allocation1 + $0x10] sm:$0xff]  ;;  %215 = vst [vmem:[%s330_s1] sm:$0xff] %v214_v42  ;;  %217 = vst [vmem:[%s330_s1 + $0x8] sm:$0xff] %v216_v43 }
  0x15   :  { %219 = vst [vmem:[%s330_s1 + $0x10] sm:$0xff] %v218_v44  ;;  %v220_v45 = vld [vmem:[#allocation1 + $0x18] sm:$0xff]  ;;  %v222_v46 = vld [vmem:[#allocation1 + $0x20] sm:$0xff] }
  0x16   :  { %221 = vst [vmem:[%s330_s1 + $0x18] sm:$0xff] %v220_v45  ;;  %v224_v47 = vld [vmem:[#allocation1 + $0x28] sm:$0xff]  ;;  %223 = vst [vmem:[%s330_s1 + $0x20] sm:$0xff] %v222_v46 }
  0x17   :  { %225 = vst [vmem:[%s330_s1 + $0x28] sm:$0xff] %v224_v47  ;;  %v226_v48 = vld [vmem:[#allocation1 + $0x30] sm:$0xff]  ;;  %v228_v49 = vld [vmem:[#allocation1 + $0x38] sm:$0xff] }
  0x18   :  { %227 = vst [vmem:[%s330_s1 + $0x30] sm:$0xff] %v226_v48  ;;  %229 = vst [vmem:[%s330_s1 + $0x38] sm:$0xff] %v228_v49 }

// kernel: spectral_conv2d.1
= control target key start
LH: loop header
LB: loop body
LE: loop exit
PB: predicated region body
PF: predicated region fallthrough
CT: control target
= control target key end

     0   :  { %v26_v0 = vlaneseq  ;;  %v534_v3 = vmov 1966171168   ;;  %s736_s0 = inlined_call_operand.vmem [shape: f32[2,4,2,128], index: 0, kind: input, shape index: {}]   ;;  %s737_s1 = inlined_call_operand.vmem [shape: f32[3,4,4,128], index: 1, kind: input, shape index: {}]   ;;  %s738_s2 = inlined_call_operand.vmem [shape: f32[2,4,128], index: 2, kind: output, shape index: {0}]   ;;  %s739_s3 = inlined_call_operand.vmem [shape: f32[2,4,128], index: 3, kind: output, shape index: {1}]  }
   0x1   :  { %v558_v1 = vld [vmem:[%s736_s0] sm:$0x3]  ;;  %v515_v2 = vld [vmem:[%s736_s0 + $0x8] sm:$0x3]  ;;  %v24_v4 = vunpack.c.l.s4 %v534_v3  ;;  %v566_v6 = vld [vmem:[%s736_s0 + $0x2] sm:$0x3] }
   0x2   :  { %v27_v5 = vshrl.u32 %v26_v0, 7  ;;  %v16_v7 = vadd.f32 %v515_v2, %v558_v1  ;;  %v519_v9 = vld [vmem:[%s736_s0 + $0xa] sm:$0x3]  ;;  %v576_v11 = vld [vmem:[%s736_s0 + $0x4] sm:$0x3] }
   0x3   :  { %v25_v8 = vunpack.c.0.s8 %v24_v4  ;;  %v135_v10 = vadd.f32 %v519_v9, %v566_v6  ;;  %v524_v12 = vld [vmem:[%s736_s0 + $0xc] sm:$0x3]  ;;  %v587_v15 = vld [vmem:[%s736_s0 + $0x6] sm:$0x3]  ;;  %v529_v17 = vld [vmem:[%s736_s0 + $0xe] sm:$0x3] }
   0x4   :  { %v259_v14 = vadd.f32 %v524_v12, %v576_v11  ;;  %v589_v16 = vsub.s32 0, %v27_v5  ;;  %v383_v24 = vadd.f32 %v529_v17, %v587_v15  ;;  %v17_v26 = vld [vmem:[%s737_s1] sm:$0xf]  ;;  %v520_v32 = vld [vmem:[%s737_s1 + $0x4] sm:$0xf] }
   0x5   :  { %v581_v13 = vsub.s32 %v25_v8, %v27_v5  ;;  %v517_v31 = vld [vmem:[%s737_s1 + $0x20] sm:$0xf]  ;;  %v522_v33 = vld [vmem:[%s737_s1 + $0x24] sm:$0xf]  ;;  %v525_v42 = vld [vmem:[%s737_s1 + $0x8] sm:$0xf] }
   0x6   :  { %v527_v43 = vld [vmem:[%s737_s1 + $0x28] sm:$0xf]  ;;  %v638_v44 = vld [vmem:[%s737_s1 + $0x2c] sm:$0xf] }
   0x7   :  { %v29_v18 = vrot.slane %v16_v7, %v581_v13  ;;  %v99_v19 = vrot.slane %v515_v2, %v581_v13  ;;  %v149_v20 = vrot.slane %v135_v10, %v581_v13  ;;  %v219_v21 = vrot.slane %v519_v9, %v581_v13  ;;  %v530_v53 = vld [vmem:[%s737_s1 + $0xc] sm:$0xf] }
   0x8   :  { %v273_v22 = vrot.slane %v259_v14, %v581_v13  ;;  %v343_v23 = vrot.slane %v524_v12, %v581_v13  ;;  %v602_v25 = vrot.slane %v529_v17, %v581_v13  ;;  %v397_v36 = vrot.slane %v383_v24, %v581_v13 }
   0x9   :  { %v37_v27 = vrot.slane %v29_v18, %v581_v13  ;;  %v107_v28 = vrot.slane %v99_v19, %v581_v13  ;;  %v157_v29 = vrot.slane %v149_v20, %v581_v13  ;;  %v227_v30 = vrot.slane %v219_v21, %v581_v13 }
   0xa   :  { %v281_v34 = vrot.slane %v273_v22, %v581_v13  ;;  %v351_v35 = vrot.slane %v343_v23, %v581_v13  ;;  %v475_v37 = vrot.slane %v602_v25, %v581_v13  ;;  %v405_v47 = vrot.slane %v397_v36, %v581_v13 }
   0xb   :  { %v48_v38 = vrot.slane %v37_v27, %v589_v16  ;;  %v118_v39 = vrot.slane %v107_v28, %v589_v16  ;;  %v168_v40 = vrot.slane %v157_v29, %v589_v16  ;;  %v238_v41 = vrot.slane %v227_v30, %v589_v16 }
   0xc   :  { %v292_v45 = vrot.slane %v281_v34, %v589_v16  ;;  %v362_v46 = vrot.slane %v351_v35, %v589_v16  ;;  %v486_v48 = vrot.slane %v475_v37, %v589_v16  ;;  %v416_v56 = vrot.slane %v405_v47, %v589_v16 }
   0xd   :  { %v644_v49 = vmul.f32 %v48_v38, %v17_v26  ;;  %v125_v50 = vmul.f32 %v517_v31, %v118_v39  ;;  %v646_v51 = vmul.f32 %v520_v32, %v168_v40  ;;  %v245_v52 = vmul.f32 %v522_v33, %v238_v41 }
   0xe   :  { %v651_v54 = vmul.f32 %v525_v42, %v292_v45  ;;  %v369_v55 = vmul.f32 %v527_v43, %v362_v46  ;;  %v493_v57 = vmul.f32 %v638_v44, %v486_v48  ;;  %v30_v60 = vcombine.high %v29_v18, %v29_v18 }
   0xf   :  { %v127_v58 = vsub.f32 %v644_v49, %v125_v50  ;;  %v247_v59 = vsub.f32 %v646_v51, %v245_v52  ;;  %v100_v61 = vcombine.high %v99_v19, %v99_v19  ;;  %v658_v63 = vmul.f32 %v530_v53, %v416_v56  ;;  %v526_v56 = vld [vmem:[%s737_s1 + $0x18] sm:$0xf] }
  0x10   :  { %v371_v62 = vsub.f32 %v651_v54, %v369_v55  ;;  %v150_v0 = vcombine.high %v149_v20, %v149_v20  ;;  %v220_v2 = vcombine.high %v219_v21, %v219_v21  ;;  %v44_v4 = vrot.slane %v30_v60, %v581_v13 }
  0x11   :  { %v251_v3 = vadd.f32 %v247_v59, %v127_v58  ;;  %v114_v5 = vrot.slane %v100_v61, %v581_v13  ;;  %v274_v7 = vcombine.high %v273_v22, %v273_v22  ;;  %v495_v8 = vsub.f32 %v658_v63, %v493_v57  ;;  %v531_v57 = vld [vmem:[%s737_s1 + $0x1c] sm:$0xf] }
  0x12   :  { %v164_v9 = vrot.slane %v150_v0, %v581_v13  ;;  %v234_v10 = vrot.slane %v220_v2, %v581_v13  ;;  %v344_v12 = vcombine.high %v343_v23, %v343_v23  ;;  %v52_v17 = vrot.slane %v44_v4, %v589_v16 }
  0x13   :  { %v375_v14 = vadd.f32 %v371_v62, %v251_v3  ;;  %v122_v18 = vrot.slane %v114_v5, %v589_v16  ;;  %v288_v19 = vrot.slane %v274_v7, %v581_v13  ;;  %v398_v24 = vcombine.high %v397_v36, %v397_v36 }
  0x14   :  { %v172_v20 = vrot.slane %v164_v9, %v589_v16  ;;  %v242_v21 = vrot.slane %v234_v10, %v589_v16  ;;  %v358_v22 = vrot.slane %v344_v12, %v581_v13  ;;  %v671_v28 = vmul.f32 %v52_v17, %v17_v26 }
  0x15   :  { %v499_v27 = vadd.f32 %v495_v8, %v375_v14  ;;  %v126_v29 = vmul.f32 %v517_v31, %v122_v18  ;;  %v296_v23 = vrot.slane %v288_v19, %v589_v16  ;;  %v412_v37 = vrot.slane %v398_v24, %v581_v13 }
  0x16   :  { %v176_v30 = vmul.f32 %v520_v32, %v172_v20  ;;  %v246_v34 = vmul.f32 %v522_v33, %v242_v21  ;;  %v366_v35 = vrot.slane %v358_v22, %v589_v16  ;;  %v468_v26 = vcombine.high %v602_v25, %v602_v25 }
  0x17   :  { %503 = vst [vmem:[%s738_s2] sm:$0xf] %v499_v27  ;;  %v128_v38 = vsub.f32 %v671_v28, %v126_v29  ;;  %v300_v39 = vmul.f32 %v525_v42, %v296_v23  ;;  %v64_v31 = vrot.slane %v558_v1, %v581_v13  ;;  %v420_v33 = vrot.slane %v412_v37, %v589_v16 }
  0x18   :  { %v248_v36 = vsub.f32 %v176_v30, %v246_v34  ;;  %v370_v32 = vmul.f32 %v527_v43, %v366_v35  ;;  %v184_v40 = vrot.slane %v566_v6, %v581_v13  ;;  %v482_v41 = vrot.slane %v468_v26, %v581_v13  ;;  %v516_v43 = vld [vmem:[%s737_s1 + $0x10] sm:$0xf] }
  0x19   :  { %v72_v45 = vrot.slane %v64_v31, %v581_v13  ;;  %v308_v42 = vrot.slane %v576_v11, %v581_v13  ;;  %v432_v25 = vrot.slane %v587_v15, %v581_v13  ;;  %v424_v1 = vmul.f32 %v530_v53, %v420_v33  ;;  %v521_v11 = vld [vmem:[%s737_s1 + $0x14] sm:$0xf] }
  0x1a   :  { %v252_v46 = vadd.f32 %v248_v36, %v128_v38  ;;  %v372_v47 = vsub.f32 %v300_v39, %v370_v32  ;;  %v192_v48 = vrot.slane %v184_v40, %v581_v13  ;;  %v490_v6 = vrot.slane %v482_v41, %v589_v16 }
  0x1b   :  { %v83_v50 = vrot.slane %v72_v45, %v589_v16  ;;  %v316_v52 = vrot.slane %v308_v42, %v581_v13  ;;  %v440_v15 = vrot.slane %v432_v25, %v581_v13  ;;  %v65_v58 = vcombine.high %v64_v31, %v64_v31 }
  0x1c   :  { %v376_v55 = vadd.f32 %v372_v47, %v252_v46  ;;  %v203_v53 = vrot.slane %v192_v48, %v589_v16  ;;  %v185_v59 = vcombine.high %v184_v40, %v184_v40  ;;  %v494_v60 = vmul.f32 %v638_v44, %v490_v6 }
  0x1d   :  { %v90_v61 = vmul.f32 %v516_v43, %v83_v50  ;;  %v327_v62 = vrot.slane %v316_v52, %v589_v16  ;;  %v451_v0 = vrot.slane %v440_v15, %v589_v16  ;;  %v79_v3 = vrot.slane %v65_v58, %v581_v13 }
  0x1e   :  { %v210_v2 = vmul.f32 %v521_v11, %v203_v53  ;;  %v199_v4 = vrot.slane %v185_v59, %v581_v13  ;;  %v309_v5 = vcombine.high %v308_v42, %v308_v42  ;;  %v496_v7 = vsub.f32 %v424_v1, %v494_v60 }
  0x1f   :  { %v129_v8 = vadd.f32 %v90_v61, %v644_v49  ;;  %v334_v9 = vmul.f32 %v526_v56, %v327_v62  ;;  %v458_v10 = vmul.f32 %v531_v57, %v451_v0  ;;  %v87_v44 = vrot.slane %v79_v3, %v589_v16 }
  0x20   :  { %v249_v12 = vadd.f32 %v210_v2, %v646_v51  ;;  %v207_v14 = vrot.slane %v199_v4, %v589_v16  ;;  %v323_v17 = vrot.slane %v309_v5, %v581_v13  ;;  %v500_v18 = vadd.f32 %v496_v7, %v376_v55 }
  0x21   :  { %v373_v19 = vadd.f32 %v334_v9, %v651_v54  ;;  %v497_v20 = vadd.f32 %v458_v10, %v658_v63  ;;  %v433_v21 = vcombine.high %v432_v25, %v432_v25  ;;  %v91_v24 = vmul.f32 %v516_v43, %v87_v44 }
  0x22   :  { %v253_v22 = vadd.f32 %v249_v12, %v129_v8  ;;  %v211_v27 = vmul.f32 %v521_v11, %v207_v14  ;;  %v331_v49 = vrot.slane %v323_v17, %v589_v16  ;;  %504 = vst [vmem:[%s738_s2 + $0x4] sm:$0xf] %v500_v18 }
  0x23   :  { %v447_v51 = vrot.slane %v433_v21, %v581_v13  ;;  %v130_v23 = vadd.f32 %v91_v24, %v671_v28 }
  0x24   :  { %v377_v29 = vadd.f32 %v373_v19, %v253_v22  ;;  %v250_v34 = vadd.f32 %v211_v27, %v176_v30  ;;  %v335_v35 = vmul.f32 %v526_v56, %v331_v49 }
  0x25   :  { %v455_v54 = vrot.slane %v447_v51, %v589_v16 }
  0x26   :  { %v501_v63 = vadd.f32 %v497_v20, %v377_v29  ;;  %v254_v37 = vadd.f32 %v250_v34, %v130_v23  ;;  %v374_v38 = vadd.f32 %v335_v35, %v300_v39 }
  0x27   :  { %v459_v26 = vmul.f32 %v531_v57, %v455_v54 }
  0x28   :  { %505 = vst [vmem:[%s739_s3] sm:$0xf] %v501_v63  ;;  %v378_v31 = vadd.f32 %v374_v38, %v254_v37 }
  0x29   :  { %v498_v36 = vadd.f32 %v459_v26, %v424_v1 }
  0x2b   :  { %v502_v32 = vadd.f32 %v498_v36, %v378_v31 }
  0x2d   :  { %506 = vst [vmem:[%s739_s3 + $0x4] sm:$0xf] %v502_v32 }

</bundles_post_ra>
